<compile_context>
chip_gen: v7x
topology: tpu7x:2x2x1
jax: 0.10.0
libtpu: 0.0.40
codegen_flags: <defaults>
</compile_context>

<pallas_src>
import jax
import jax.numpy as jnp
from jax.experimental import pallas as pl
from jax.experimental.pallas import tpu as pltpu

_LANE = 128
_SUBLANE = 8
_TB_MAX = 512   # batch tile rows (85%+ of HBM roofline vs 63% at 256)


def _round_up(n, m):
    return ((n + m - 1) // m) * m


def _pad2d(a, rows, cols):
    r, c = a.shape
    return jnp.pad(a, ((0, rows - r), (0, cols - c)))


def _feature_align():
    """256-aligned contractions on v6e/v7x (2x256^2 MXU); 128 is optimal on v5e."""
    try:
        kind = jax.devices()[0].device_kind.lower()
        if "v5" in kind:
            return 128
    except Exception:
        pass
    return 256


def _pad_feature(d, align):
    return _round_up(d, _LANE) if d <= _LANE else _round_up(d, align)


def prepare_mlp_params(params, n_inputs):
    """Pad + cast weights/biases ONCE (outside the per-forward path).

    params: list of (W:(din,dout) f32, b:(1,dout) f32)
    Returns list of (W padded bf16, b padded f32) with lane/MXU-aligned feature dims.
    """
    align = _feature_align()
    dims = [n_inputs] + [w.shape[1] for w, _ in params]
    dims_p = [_pad_feature(d, align) for d in dims]
    prepared = []
    for li, (w, b) in enumerate(params):
        wp = _pad2d(w.astype(jnp.float32), dims_p[li], dims_p[li + 1]).astype(jnp.bfloat16)
        bp = _pad2d(b.reshape(1, -1).astype(jnp.float32), 1, dims_p[li + 1])
        prepared.append((wp, bp))
    return prepared


def _make_fused_mlp_kernel(num_layers, n_classes):
    """Fused kernel: (linear -> relu) x num_layers, then masked softmax(dim=1)."""

    def kernel(*refs):
        x_ref = refs[0]
        o_ref = refs[-1]
        h = x_ref[...]                                   # bf16 activations into the MXU
        logits = None
        for li in range(num_layers):
            w = refs[1 + 2 * li][...]                    # bf16 weights
            b = refs[2 + 2 * li][...]                    # f32 bias
            acc = jnp.dot(h, w, preferred_element_type=jnp.float32) + b
            logits = jnp.maximum(acc, 0.0)               # ReLU after EVERY layer (incl. final)
            if li + 1 < num_layers:
                h = logits.astype(jnp.bfloat16)          # bf16 only where the MXU reads it
        # softmax(dim=1) over the logical class columns only; padded lanes masked out
        # (padded logits are exactly 0 after ReLU and would pollute max/sum otherwise).
        lane = jax.lax.broadcasted_iota(jnp.int32, logits.shape, dimension=1)
        z = jnp.where(lane < n_classes, logits, -1e30)
        z = z - jnp.max(z, axis=1, keepdims=True)
        e = jnp.exp(z)
        denom = jnp.sum(e, axis=1, keepdims=True)
        inv = pl.reciprocal(denom, approx=True)          # EUP slot
        inv = inv * (2.0 - denom * inv)                  # one Newton step -> full f32 accuracy
        o_ref[...] = e * inv

    return kernel


def mlp_forward(x, prepared_params, n_classes):
    """x: (B, n_inputs); prepared_params from prepare_mlp_params(). -> (B, n_classes) f32."""
    B, _ = x.shape
    num_layers = len(prepared_params)
    dims_p = [prepared_params[0][0].shape[0]] + [w.shape[1] for w, _ in prepared_params]

    # Batch tiling: up to 512-row tiles; force >=2 tiles when B > 256 so the
    # "parallel" grid axis can span both v7x TensorCores.
    if B <= 256:
        tb = _round_up(max(B, 1), _SUBLANE)
    else:
        tb = min(_TB_MAX, _round_up(-(-B // 2), _SUBLANE))
    b_pad = _round_up(B, tb)
    n_tiles = b_pad // tb

    # VMEM budget: single-buffered resident weights/biases + double-buffered x/out
    # tiles + live f32 intermediates, with 2x headroom, capped for v7x (64 MiB phys).
    w_bytes = sum(w.size * w.dtype.itemsize + b.size * b.dtype.itemsize
                  for w, b in prepared_params)
    if w_bytes > 32 * 1024 * 1024:
        # TODO(synk): tile the widest layer over its output-N dim (extra grid axis) or
        # stream its K-chunks with pltpu.emit_pipeline instead of keeping every weight
        # resident -- required once padded weights exceed ~half of v7x's 64 MiB VMEM.
        raise NotImplementedError("padded weights exceed the all-resident VMEM budget")
    io_bytes = 2 * tb * dims_p[0] * 2 + 2 * tb * dims_p[-1] * 4
    act_bytes = 4 * tb * max(dims_p) * 4
    vmem_limit = int(min(max(2 * (w_bytes + io_bytes + act_bytes), 32 * 1024 * 1024),
                         64 * 1024 * 1024))

    # Only x is padded per call (cheap); weights/biases were prepared once.
    x_p = _pad2d(x.astype(jnp.float32), b_pad, dims_p[0]).astype(jnp.bfloat16)

    operands = [x_p]
    in_specs = [pl.BlockSpec((tb, dims_p[0]), lambda i: (i, 0))]
    for li, (w, b) in enumerate(prepared_params):
        din_p, dout_p = dims_p[li], dims_p[li + 1]
        operands.append(w)
        operands.append(b)
        # Grid-invariant operands: single buffer, no pointless double-buffering.
        in_specs.append(pl.BlockSpec((din_p, dout_p), lambda i: (0, 0),
                                     pipeline_mode=pl.Buffered(1)))
        in_specs.append(pl.BlockSpec((1, dout_p), lambda i: (0, 0),
                                     pipeline_mode=pl.Buffered(1)))

    out = pl.pallas_call(
        _make_fused_mlp_kernel(num_layers, n_classes),
        out_shape=jax.ShapeDtypeStruct((b_pad, dims_p[-1]), jnp.float32),
        grid=(n_tiles,),
        in_specs=in_specs,
        out_specs=pl.BlockSpec((tb, dims_p[-1]), lambda i: (i, 0)),
        compiler_params=pltpu.CompilerParams(
            dimension_semantics=("parallel",),
            vmem_limit_bytes=vmem_limit,
        ),
    )(*operands)

    return out[:B, :n_classes]


def xavier_uniform(key, fan_in, fan_out):
    bound = jnp.sqrt(6.0 / (fan_in + fan_out))
    return jax.random.uniform(
        key, (fan_in, fan_out), jnp.float32, minval=-bound, maxval=bound
    )


def init_mlp_params(key, n_inputs, n_hidden, n_classes):
    """Xavier-uniform weights (stored (in,out)), biases filled with 0.01."""
    dims = [n_inputs] + list(n_hidden) + [n_classes]
    params = []
    for i in range(len(dims) - 1):
        key, sub = jax.random.split(key)
        w = xavier_uniform(sub, dims[i], dims[i + 1])
        b = jnp.full((1, dims[i + 1]), 0.01, dtype=jnp.float32)
        params.append((w, b))
    return params


if __name__ == "__main__":
    n_inputs, n_hidden, n_classes = 32, [64, 32], 10
    batch = 8

    key = jax.random.PRNGKey(0)
    kx, kp = jax.random.split(key)
    x = jax.random.normal(kx, (batch, n_inputs), dtype=jnp.float32)
    params = init_mlp_params(kp, n_inputs, n_hidden, n_classes)

    # Pad / cast weights ONCE, reuse on every forward call.
    prepared = prepare_mlp_params(params, n_inputs)

    fwd = jax.jit(mlp_forward, static_argnums=2)
    out = jax.block_until_ready(fwd(x, prepared, n_classes))
    assert out.shape == (batch, n_classes)

    # Reference 1: same bf16-MXU numerics as the kernel (tight tolerance).
    def reference_bf16(xv):
        h = xv.astype(jnp.bfloat16)
        logits = None
        for w, b in params:
            logits = jnp.maximum(
                jnp.dot(h, w.astype(jnp.bfloat16),
                        preferred_element_type=jnp.float32) + b, 0.0)
            h = logits.astype(jnp.bfloat16)
        z = logits - jnp.max(logits, axis=1, keepdims=True)
        e = jnp.exp(z)
        return e / jnp.sum(e, axis=1, keepdims=True)

    # Reference 2: full-f32 PyTorch-equivalent forward (tolerance = bf16 MXU precision).
    def reference_f32(xv):
        h = xv
        for w, b in params:
            h = jnp.maximum(h @ w + b, 0.0)   # relu after every linear, incl. final
        h = h - jnp.max(h, axis=1, keepdims=True)
        e = jnp.exp(h)
        return e / jnp.sum(e, axis=1, keepdims=True)

    assert bool(jnp.allclose(out, reference_bf16(x), atol=5e-3, rtol=5e-3))
    assert bool(jnp.allclose(out, reference_f32(x), atol=3e-2, rtol=3e-2))
    assert bool(jnp.all(jnp.abs(jnp.sum(out, axis=1) - 1.0) < 1e-4))  # Newton-refined recip
    assert bool(jnp.all(out >= 0.0))

    print("KERNEL_OK")
</pallas_src>

<mosaic_0001>
module attributes {stable_mosaic.version = 11 : i64} {
  func.func @kernel(%arg0: i32, %arg1: memref<8x128xbf16, #tpu.memory_space<vmem>>, %arg2: memref<128x128xbf16, #tpu.memory_space<vmem>>, %arg3: memref<1x128xf32, #tpu.memory_space<vmem>>, %arg4: memref<128x128xbf16, #tpu.memory_space<vmem>>, %arg5: memref<1x128xf32, #tpu.memory_space<vmem>>, %arg6: memref<128x128xbf16, #tpu.memory_space<vmem>>, %arg7: memref<1x128xf32, #tpu.memory_space<vmem>>, %arg8: memref<8x128xf32, #tpu.memory_space<vmem>>) attributes {dimension_semantics = [#tpu.dimension_semantics<parallel>], iteration_bounds = array<i64: 1>, scalar_prefetch = 0 : i64, scratch_operands = 0 : i64, tpu.core_type = #tpu.core_type<tc>, window_params = [{transform_indices = @transform_0, window_bounds = array<i64: 8, 128>}, {pipeline_mode = #tpu.pipeline_mode<synchronous>, transform_indices = @transform_1, window_bounds = array<i64: 128, 128>}, {pipeline_mode = #tpu.pipeline_mode<synchronous>, transform_indices = @transform_2, window_bounds = array<i64: 1, 128>}, {pipeline_mode = #tpu.pipeline_mode<synchronous>, transform_indices = @transform_3, window_bounds = array<i64: 128, 128>}, {pipeline_mode = #tpu.pipeline_mode<synchronous>, transform_indices = @transform_4, window_bounds = array<i64: 1, 128>}, {pipeline_mode = #tpu.pipeline_mode<synchronous>, transform_indices = @transform_5, window_bounds = array<i64: 128, 128>}, {pipeline_mode = #tpu.pipeline_mode<synchronous>, transform_indices = @transform_6, window_bounds = array<i64: 1, 128>}, {transform_indices = @transform_7, window_bounds = array<i64: 8, 128>}]} {
    %c0 = arith.constant 0 : index
    %c0_0 = arith.constant 0 : index
    %0 = vector.load %arg1[%c0, %c0_0] : memref<8x128xbf16, #tpu.memory_space<vmem>>, vector<8x128xbf16>
    %c0_1 = arith.constant 0 : index
    %c0_2 = arith.constant 0 : index
    %1 = vector.load %arg2[%c0_1, %c0_2] : memref<128x128xbf16, #tpu.memory_space<vmem>>, vector<128x128xbf16>
    %c0_3 = arith.constant 0 : index
    %c0_4 = arith.constant 0 : index
    %2 = vector.load %arg3[%c0_3, %c0_4] : memref<1x128xf32, #tpu.memory_space<vmem>>, vector<1x128xf32>
    %cst = arith.constant dense<0.000000e+00> : vector<8x128xf32>
    %3 = tpu.matmul %0, %1, %cst {dimension_numbers = #tpu.dot_dimension_numbers<[1], [0], [0], [1], [0, 0, 1, 1], [], []>} : vector<8x128xbf16>, vector<128x128xbf16>, vector<8x128xf32> -> vector<8x128xf32>
    %4 = vector.broadcast %2 : vector<1x128xf32> to vector<8x128xf32>
    %5 = arith.addf %3, %4 : vector<8x128xf32>
    %cst_5 = arith.constant 0.000000e+00 : f32
    %6 = vector.broadcast %cst_5 : f32 to vector<8x128xf32>
    %7 = arith.maximumf %5, %6 : vector<8x128xf32>
    %8 = arith.truncf %7 : vector<8x128xf32> to vector<8x128xbf16>
    %c0_6 = arith.constant 0 : index
    %c0_7 = arith.constant 0 : index
    %9 = vector.load %arg4[%c0_6, %c0_7] : memref<128x128xbf16, #tpu.memory_space<vmem>>, vector<128x128xbf16>
    %c0_8 = arith.constant 0 : index
    %c0_9 = arith.constant 0 : index
    %10 = vector.load %arg5[%c0_8, %c0_9] : memref<1x128xf32, #tpu.memory_space<vmem>>, vector<1x128xf32>
    %cst_10 = arith.constant dense<0.000000e+00> : vector<8x128xf32>
    %11 = tpu.matmul %8, %9, %cst_10 {dimension_numbers = #tpu.dot_dimension_numbers<[1], [0], [0], [1], [0, 0, 1, 1], [], []>} : vector<8x128xbf16>, vector<128x128xbf16>, vector<8x128xf32> -> vector<8x128xf32>
    %12 = vector.broadcast %10 : vector<1x128xf32> to vector<8x128xf32>
    %13 = arith.addf %11, %12 : vector<8x128xf32>
    %cst_11 = arith.constant 0.000000e+00 : f32
    %14 = vector.broadcast %cst_11 : f32 to vector<8x128xf32>
    %15 = arith.maximumf %13, %14 : vector<8x128xf32>
    %16 = arith.truncf %15 : vector<8x128xf32> to vector<8x128xbf16>
    %c0_12 = arith.constant 0 : index
    %c0_13 = arith.constant 0 : index
    %17 = vector.load %arg6[%c0_12, %c0_13] : memref<128x128xbf16, #tpu.memory_space<vmem>>, vector<128x128xbf16>
    %c0_14 = arith.constant 0 : index
    %c0_15 = arith.constant 0 : index
    %18 = vector.load %arg7[%c0_14, %c0_15] : memref<1x128xf32, #tpu.memory_space<vmem>>, vector<1x128xf32>
    %cst_16 = arith.constant dense<0.000000e+00> : vector<8x128xf32>
    %19 = tpu.matmul %16, %17, %cst_16 {dimension_numbers = #tpu.dot_dimension_numbers<[1], [0], [0], [1], [0, 0, 1, 1], [], []>} : vector<8x128xbf16>, vector<128x128xbf16>, vector<8x128xf32> -> vector<8x128xf32>
    %20 = vector.broadcast %18 : vector<1x128xf32> to vector<8x128xf32>
    %21 = arith.addf %19, %20 : vector<8x128xf32>
    %cst_17 = arith.constant 0.000000e+00 : f32
    %22 = vector.broadcast %cst_17 : f32 to vector<8x128xf32>
    %23 = arith.maximumf %21, %22 : vector<8x128xf32>
    %24 = tpu.iota {dimensions = array<i32: 1>} : vector<8x128xi32>
    %c10_i32 = arith.constant 10 : i32
    %25 = vector.broadcast %c10_i32 : i32 to vector<8x128xi32>
    %26 = arith.cmpi slt, %24, %25 : vector<8x128xi32>
    %cst_18 = arith.constant -1.000000e+30 : f32
    %27 = vector.broadcast %cst_18 : f32 to vector<8x128xf32>
    %28 = arith.select %26, %23, %27 : vector<8x128xi1>, vector<8x128xf32>
    %cst_19 = arith.constant dense<0xFF800000> : vector<8xf32>
    %29 = vector.multi_reduction <maximumf>, %28, %cst_19 [1] : vector<8x128xf32> to vector<8xf32>
    %30 = vector.shape_cast %29 : vector<8xf32> to vector<8x1xf32>
    %31 = vector.broadcast %30 : vector<8x1xf32> to vector<8x128xf32>
    %32 = arith.subf %28, %31 : vector<8x128xf32>
    %33 = math.exp %32 : vector<8x128xf32>
    %cst_20 = arith.constant dense<0.000000e+00> : vector<8xf32>
    %34 = vector.multi_reduction <add>, %33, %cst_20 [1] : vector<8x128xf32> to vector<8xf32>
    %35 = vector.shape_cast %34 : vector<8xf32> to vector<8x1xf32>
    %36 = tpu.reciprocal %35 {approx = true} : vector<8x1xf32> -> vector<8x1xf32>
    %37 = arith.mulf %35, %36 : vector<8x1xf32>
    %cst_21 = arith.constant 2.000000e+00 : f32
    %38 = vector.broadcast %cst_21 : f32 to vector<8x1xf32>
    %39 = arith.subf %38, %37 : vector<8x1xf32>
    %40 = arith.mulf %36, %39 : vector<8x1xf32>
    %41 = vector.broadcast %40 : vector<8x1xf32> to vector<8x128xf32>
    %42 = arith.mulf %33, %41 : vector<8x128xf32>
    %c0_22 = arith.constant 0 : index
    %c0_23 = arith.constant 0 : index
    %43 = vector.load %arg8[%c0_22, %c0_23] : memref<8x128xf32, #tpu.memory_space<vmem>>, vector<8x128xf32>
    tpu.vector_store %arg8[%c0_22, %c0_23], %42 {strides = array<i32>} : memref<8x128xf32, #tpu.memory_space<vmem>>, vector<8x128xf32>,
    return
  }
  func.func @transform_0(%arg0: i32) -> (i32, i32) {
    %c0_i32 = arith.constant 0 : i32
    %c0_i32_0 = arith.constant 0 : i32
    return %arg0, %c0_i32 : i32, i32
  }
  func.func @transform_1(%arg0: i32) -> (i32, i32) {
    %c0_i32 = arith.constant 0 : i32
    %c0_i32_0 = arith.constant 0 : i32
    %c0_i32_1 = arith.constant 0 : i32
    return %c0_i32, %c0_i32_0 : i32, i32
  }
  func.func @transform_2(%arg0: i32) -> (i32, i32) {
    %c0_i32 = arith.constant 0 : i32
    %c0_i32_0 = arith.constant 0 : i32
    %c0_i32_1 = arith.constant 0 : i32
    return %c0_i32, %c0_i32_0 : i32, i32
  }
  func.func @transform_3(%arg0: i32) -> (i32, i32) {
    %c0_i32 = arith.constant 0 : i32
    %c0_i32_0 = arith.constant 0 : i32
    %c0_i32_1 = arith.constant 0 : i32
    return %c0_i32, %c0_i32_0 : i32, i32
  }
  func.func @transform_4(%arg0: i32) -> (i32, i32) {
    %c0_i32 = arith.constant 0 : i32
    %c0_i32_0 = arith.constant 0 : i32
    %c0_i32_1 = arith.constant 0 : i32
    return %c0_i32, %c0_i32_0 : i32, i32
  }
  func.func @transform_5(%arg0: i32) -> (i32, i32) {
    %c0_i32 = arith.constant 0 : i32
    %c0_i32_0 = arith.constant 0 : i32
    %c0_i32_1 = arith.constant 0 : i32
    return %c0_i32, %c0_i32_0 : i32, i32
  }
  func.func @transform_6(%arg0: i32) -> (i32, i32) {
    %c0_i32 = arith.constant 0 : i32
    %c0_i32_0 = arith.constant 0 : i32
    %c0_i32_1 = arith.constant 0 : i32
    return %c0_i32, %c0_i32_0 : i32, i32
  }
  func.func @transform_7(%arg0: i32) -> (i32, i32) {
    %c0_i32 = arith.constant 0 : i32
    %c0_i32_0 = arith.constant 0 : i32
    return %arg0, %c0_i32 : i32, i32
  }
}

</mosaic_0001>

<bundles_post_ra>
// kernel: mlp_forward.1
= control target key start
LH: loop header
LB: loop body
LE: loop exit
PB: predicated region body
PF: predicated region fallthrough
CT: control target
= control target key end

     0   :  { %12 = vsyncpa [#allocation3], 0  ;;  %s839_s0 = inlined_call_operand.vmem [shape: bf16[8,128], index: 0, kind: input, shape index: {}]   ;;  %s840_s1 = inlined_call_operand.hbm [shape: bf16[128,128], index: 1, kind: input, shape index: {}]   ;;  %s841_s2 = inlined_call_operand.vmem [shape: f32[1,128], index: 2, kind: input, shape index: {}]   ;;  %s842_s3 = inlined_call_operand.hbm [shape: bf16[128,128], index: 3, kind: input, shape index: {}]   ;;  %s843_s4 = inlined_call_operand.vmem [shape: f32[1,128], index: 4, kind: input, shape index: {}]   ;;  %s844_s5 = inlined_call_operand.hbm [shape: bf16[128,128], index: 5, kind: input, shape index: {}]   ;;  %s845_s6 = inlined_call_operand.vmem [shape: f32[1,128], index: 6, kind: input, shape index: {}]   ;;  %s846_s7 = inlined_call_operand.hbm [shape: f32[8,128], index: 7, kind: output, shape index: {}]  }
   0x1   :  { %13 = vsyncpa [#allocation6], 0 }
   0x2   :  { %14 = vsyncpa [#allocation4], 0  ;;  %s685_s24 = smov [#allocation5]   ;;  %s686_s26 = smov [#allocation2]  }
   0x3   :  { %s36_s25 = sshll.u32 %s685_s24, 4  ;;  %s22_s27 = sshll.u32 %s686_s26, 4  ;;  %s37_s25 = int_to_ptr.vmem [resolvable:$true] %s36_s25  ;;  %s733_s27 = int_to_ptr.vmem [resolvable:$true] %s22_s27 }
   0x4   :  { %s591_s30 = scalar_lea.hbm %s842_s3, 1024 }
   0x5   :  { %p592_p0 = scmp.ne.s32.totalorder %s842_s3, %s591_s30  ;;  %p595_p1 = scmp.lt.u32.totalorder %s591_s30, %s842_s3 }
   0x7   :  { %p597_p2 = pnand %p595_p1, %p592_p0 }
   0x9   :  { %600 = shalt.err (!%p597_p2)
}
   0xa   :  { %s601_s12 = scalar_lea.vmem %s37_s25, 1024  ;;  %p606_p4 = scmp.lt.s32.totalorder %s37_s25, %s37_s25 }
   0xb   :  { %p602_p3 = scmp.ne.s32.totalorder %s37_s25, %s601_s12  ;;  %p607_p5 = scmp.lt.s32.totalorder %s601_s12, %s601_s12 }
   0xd   :  { %p608_p6 = por %p607_p5, %p606_p4 }
   0xf   :  { %p609_p7 = pnand %p608_p6, %p602_p3 }
  0x11   :  { %612 = shalt.err (!%p609_p7)
}
  0x12   :  { %s687_s13 = smov 64   ;;  %s688_s14 = smov 4  }
  0x13   :  { %42 = dma.hbm_to_vmem [thread:$0]  %s842_s3, 1024, %s37_s25, [#allocation6], %s687_s13, %s687_s13, %s688_s14  }
  0x14   :  { %s613_s19 = scalar_lea.hbm %s840_s1, 1024 }
  0x15   :  { %p614_p8 = scmp.ne.s32.totalorder %s840_s1, %s613_s19  ;;  %p617_p9 = scmp.lt.u32.totalorder %s613_s19, %s840_s1 }
  0x17   :  { %p619_p10 = pnand %p617_p9, %p614_p8 }
  0x19   :  { %622 = shalt.err (!%p619_p10)
}
  0x1a   :  { %s623_s24 = scalar_lea.vmem %s733_s27, 1024  ;;  %p628_p12 = scmp.lt.s32.totalorder %s733_s27, %s733_s27 }
  0x1b   :  { %p624_p11 = scmp.ne.s32.totalorder %s733_s27, %s623_s24  ;;  %p629_p13 = scmp.lt.s32.totalorder %s623_s24, %s623_s24 }
  0x1d   :  { %p630_p0 = por %p629_p13, %p628_p12 }
  0x1f   :  { %p631_p1 = pnand %p630_p0, %p624_p11 }
  0x21   :  { %634 = shalt.err (!%p631_p1)
}
  0x22   :  { %28 = dma.hbm_to_vmem [thread:$0]  %s840_s1, 1024, %s733_s27, [#allocation3], %s687_s13, %s687_s13, %s688_s14  }
  0x23   :  { %s689_s26 = smov [#allocation7]   ;;  %s635_s8 = scalar_lea.hbm %s844_s5, 1024 }
  0x24   :  { %s50_s28 = sshll.u32 %s689_s26, 4  ;;  %p636_p2 = scmp.ne.s32.totalorder %s844_s5, %s635_s8  ;;  %s51_s28 = int_to_ptr.vmem [resolvable:$true] %s50_s28 }
  0x25   :  { %p639_p3 = scmp.lt.u32.totalorder %s635_s8, %s844_s5 }
  0x27   :  { %p641_p4 = pnand %p639_p3, %p636_p2 }
  0x29   :  { %644 = shalt.err (!%p641_p4)
}
  0x2a   :  { %s645_s15 = scalar_lea.vmem %s51_s28, 1024  ;;  %p650_p6 = scmp.lt.s32.totalorder %s51_s28, %s51_s28 }
  0x2b   :  { %p646_p5 = scmp.ne.s32.totalorder %s51_s28, %s645_s15  ;;  %p651_p7 = scmp.lt.s32.totalorder %s645_s15, %s645_s15 }
  0x2d   :  { %p652_p8 = por %p651_p7, %p650_p6 }
  0x2f   :  { %p653_p9 = pnand %p652_p8, %p646_p5 }
  0x31   :  { %656 = shalt.err (!%p653_p9)
}
  0x32   :  { %56 = dma.hbm_to_vmem [thread:$0]  %s844_s5, 1024, %s51_s28, [#allocation6], %s687_s13, %s687_s13, %s688_s14  }
  0x33   :  { %679 = dma.done.wait [#allocation3], 1024  }
  0x34   :  { %680 = vsyncadd [#allocation3], 4294966272 }
  0x35   :  { %681 = dma.done.wait [#allocation6], 2048  }
  0x36   :  { %682 = vsyncadd [#allocation6], 4294965248  ;;  %v690_v0 = vmov 0.0   ;;  %vm691_vm0 = vmmov 0   ;;  %v563_v1 = vld [vmem:[#allocation2] sm:$0xff]   ;;  %v564_v2 = vld [vmem:[#allocation2 + $0x8] sm:$0xff]   ;;  %v408_v42 = vlaneseq }
  0x37   :  { %495 = vmatprep.subr.bf16.mxu0 %v690_v0  ;;  %511 = vmatprep.mubr.msk.bf16.mxu0 %vm691_vm0, %v690_v0  ;;  %v565_v3 = vld [vmem:[#allocation2 + $0x10] sm:$0xff]   ;;  %v571_v4 = vld [vmem:[#allocation5] sm:$0xff]   ;;  %v566_v5 = vld [vmem:[#allocation2 + $0x18] sm:$0xff]  }
  0x38   :  { %515 = vmatprep.subr.bf16.mxu1 %v690_v0  ;;  %531 = vmatprep.mubr.msk.bf16.mxu1 %vm691_vm0, %v690_v0  ;;  %v572_v6 = vld [vmem:[#allocation5 + $0x8] sm:$0xff]   ;;  %v567_v7 = vld [vmem:[#allocation2 + $0x20] sm:$0xff]   ;;  %v573_v8 = vld [vmem:[#allocation5 + $0x10] sm:$0xff]   ;;  %v409_v44 = vand.u32 127, %v408_v42 }
  0x39   :  { %496 = vmatpush3.bf16.msra.mxu0 %v563_v1  ;;  %516 = vmatpush3.bf16.msra.mxu1 %v571_v4  ;;  %v568_v9 = vld [vmem:[#allocation2 + $0x28] sm:$0xff]   ;;  %v574_v10 = vld [vmem:[#allocation5 + $0x18] sm:$0xff]   ;;  %v569_v11 = vld [vmem:[#allocation2 + $0x30] sm:$0xff]  }
  0x3a   :  { %497 = vmatprep.subr.bf16.mxu0 %v690_v0  ;;  %517 = vmatprep.subr.bf16.mxu1 %v690_v0  ;;  %v575_v12 = vld [vmem:[#allocation5 + $0x20] sm:$0xff]   ;;  %v570_v13 = vld [vmem:[#allocation2 + $0x38] sm:$0xff]   ;;  %v576_v14 = vld [vmem:[#allocation5 + $0x28] sm:$0xff]   ;;  %vm410_vm1 = vcmp.lt.s32.totalorder %v409_v44, 10 }
  0x3b   :  { %v69_v15 = vld [vmem:[%s839_s0] sm:$0xf]  ;;  %v577_v16 = vld [vmem:[#allocation5 + $0x30] sm:$0xff]   ;;  %v578_v17 = vld [vmem:[#allocation5 + $0x38] sm:$0xff]  }
  0x3c   :  { %v579_v18 = vld [vmem:[#allocation7] sm:$0xff]   ;;  %v580_v19 = vld [vmem:[#allocation7 + $0x8] sm:$0xff]   ;;  %v581_v20 = vld [vmem:[#allocation7 + $0x10] sm:$0xff]  }
  0x3d   :  { %498 = vmatpush3.bf16.msra.mxu0 %v564_v2  ;;  %518 = vmatpush3.bf16.msra.mxu1 %v572_v6  ;;  %v582_v21 = vld [vmem:[#allocation7 + $0x18] sm:$0xff]   ;;  %v583_v22 = vld [vmem:[#allocation7 + $0x20] sm:$0xff]   ;;  %v584_v23 = vld [vmem:[#allocation7 + $0x28] sm:$0xff]  }
  0x3e   :  { %499 = vmatprep.subr.bf16.mxu0 %v690_v0  ;;  %519 = vmatprep.subr.bf16.mxu1 %v690_v0  ;;  %v441_v24 = vld [vmem:[%s841_s2] ss:$0 sm:$0xff]  ;;  %v585_v32 = vld [vmem:[#allocation7 + $0x30] sm:$0xff]   ;;  %v586_v33 = vld [vmem:[#allocation7 + $0x38] sm:$0xff]  }
  0x3f   :  { %v450_v34 = vld [vmem:[%s843_s4] ss:$0 sm:$0xff]  ;;  %s692_s4 = smov [#allocation8]  }
  0x40   :  { %v459_v43 = vld [vmem:[%s845_s6] ss:$0 sm:$0xff]  ;;  %s431_s6 = sshll.u32 %s692_s4, 4  ;;  %s432_s6 = int_to_ptr.vmem [resolvable:$true] %s431_s6 }
  0x41   :  { %500 = vmatpush3.bf16.msra.mxu0 %v565_v3  ;;  %520 = vmatpush3.bf16.msra.mxu1 %v573_v8  ;;  %s657_s19 = scalar_lea.vmem %s432_s6, 128  ;;  %p662_p11 = scmp.lt.s32.totalorder %s432_s6, %s432_s6 }
  0x42   :  { %501 = vmatprep.subr.bf16.mxu0 %v690_v0  ;;  %521 = vmatprep.subr.bf16.mxu1 %v690_v0  ;;  %p658_p10 = scmp.ne.s32.totalorder %s432_s6, %s657_s19  ;;  %p663_p12 = scmp.lt.s32.totalorder %s657_s19, %s657_s19 }
  0x44   :  { %p664_p13 = por %p663_p12, %p662_p11 }
  0x45   :  { %502 = vmatpush3.bf16.msra.mxu0 %v566_v5  ;;  %522 = vmatpush3.bf16.msra.mxu1 %v574_v10 }
  0x46   :  { %503 = vmatprep.subr.bf16.mxu0 %v690_v0  ;;  %523 = vmatprep.subr.bf16.mxu1 %v690_v0  ;;  %p665_p0 = pnand %p664_p13, %p658_p10 }
  0x49   :  { %504 = vmatpush3.bf16.msra.mxu0 %v567_v7  ;;  %524 = vmatpush3.bf16.msra.mxu1 %v575_v12 }
  0x4a   :  { %505 = vmatprep.subr.bf16.mxu0 %v690_v0  ;;  %525 = vmatprep.subr.bf16.mxu1 %v690_v0 }
  0x4d   :  { %506 = vmatpush3.bf16.msra.mxu0 %v568_v9  ;;  %526 = vmatpush3.bf16.msra.mxu1 %v576_v14 }
  0x4e   :  { %507 = vmatprep.subr.bf16.mxu0 %v690_v0  ;;  %527 = vmatprep.subr.bf16.mxu1 %v690_v0 }
  0x51   :  { %508 = vmatpush3.bf16.msra.mxu0 %v569_v11  ;;  %528 = vmatpush3.bf16.msra.mxu1 %v577_v16 }
  0x52   :  { %509 = vmatprep.subr.bf16.mxu0 %v690_v0  ;;  %529 = vmatprep.subr.bf16.mxu1 %v690_v0 }
  0x55   :  { %510 = vmatpush3.bf16.msra.mxu0 %v570_v13  ;;  %530 = vmatpush3.bf16.msra.mxu1 %v578_v17 }
  0x56   :  { %535 = vmatprep.subr.bf16.mxu0 %v690_v0 }
  0x58   :  { %512 = vmatmul.mubr.bf16.vlgmr.msra.gmra.mrb[0].mxu0 %v69_v15 }
  0x59   :  { %551 = vmatprep.mubr.msk.bf16.mxu0 %vm691_vm0, %v690_v0  ;;  %536 = vmatpush3.bf16.msra.mxu0 %v579_v18 }
  0x5a   :  { %537 = vmatprep.subr.bf16.mxu0 %v690_v0 }
  0x5d   :  { %538 = vmatpush3.bf16.msra.mxu0 %v580_v19 }
  0x5e   :  { %539 = vmatprep.subr.bf16.mxu0 %v690_v0 }
  0x61   :  { %540 = vmatpush3.bf16.msra.mxu0 %v581_v20 }
  0x62   :  { %541 = vmatprep.subr.bf16.mxu0 %v690_v0 }
  0x65   :  { %542 = vmatpush3.bf16.msra.mxu0 %v582_v21 }
  0x66   :  { %543 = vmatprep.subr.bf16.mxu0 %v690_v0 }
  0x69   :  { %544 = vmatpush3.bf16.msra.mxu0 %v583_v22 }
  0x6a   :  { %545 = vmatprep.subr.bf16.mxu0 %v690_v0 }
  0x6d   :  { %546 = vmatpush3.bf16.msra.mxu0 %v584_v23 }
  0x6e   :  { %547 = vmatprep.subr.bf16.mxu0 %v690_v0 }
  0x71   :  { %548 = vmatpush3.bf16.msra.mxu0 %v585_v32 }
  0x72   :  { %549 = vmatprep.subr.bf16.mxu0 %v690_v0 }
  0x75   :  { %550 = vmatpush3.bf16.msra.mxu0 %v586_v33 }
 0x12b   :  { %v175_v25 = vpop.f32.mrb[0].mxu0 }
 0x12c   :  { %v176_v26 = vadd.f32 %v441_v24, %v175_v25  ;;  %v513_v27 = vpop.f32.mrb[1].mxu0 }
 0x12d   :  { %v178_v28 = vpop.f32.mrb[2].mxu0 }
 0x12e   :  { %v181_v29 = vmax.f32 %v176_v26, 0.0  ;;  %v514_v30 = vpop.f32.mrb[3].mxu0 }
 0x130   :  { %v182_v31 = vpack.c.bf16 %v181_v29, %v181_v29 }
 0x132   :  { %532 = vmatmul.mubr.bf16.vlgmr.msra.gmra.mrb[0].mxu1 %v182_v31 }
 0x205   :  { %v288_v35 = vpop.f32.mrb[0].mxu1 }
 0x206   :  { %v289_v36 = vadd.f32 %v450_v34, %v288_v35  ;;  %v533_v37 = vpop.f32.mrb[1].mxu1 }
 0x207   :  { %v291_v38 = vpop.f32.mrb[2].mxu1 }
 0x208   :  { %v294_v39 = vmax.f32 %v289_v36, 0.0  ;;  %v534_v40 = vpop.f32.mrb[3].mxu1 }
 0x20a   :  { %v295_v41 = vpack.c.bf16 %v294_v39, %v294_v39 }
 0x20c   :  { %552 = vmatmul.mubr.bf16.vlgmr.msra.gmra.mrb[4].mxu0 %v295_v41 }
 0x2df   :  { %v401_v45 = vpop.f32.mrb[4].mxu0 }
 0x2e0   :  { %v402_v46 = vadd.f32 %v459_v43, %v401_v45  ;;  %v553_v47 = vpop.f32.mrb[5].mxu0 }
 0x2e1   :  { %v404_v48 = vpop.f32.mrb[6].mxu0 }
 0x2e2   :  { %v407_v49 = vmax.f32 %v402_v46, 0.0  ;;  %v554_v50 = vpop.f32.mrb[7].mxu0 }
 0x2e4   :  { %v411_v51 = vsel %vm410_vm1, %v407_v49, -1e+30 }
 0x2e5   :  { %412 = vmax.xlane.f32.xlu0 %v411_v51 }
 0x372   :  { %v413_v52 = vpop.xlane.xlu0 %412 }
 0x373   :  { %v414_v53 = vsub.f32 %v411_v51, %v413_v52 }
 0x375   :  { %v415_v54 = vmul.f32 1.442695, %v414_v53 }
 0x377   :  { %587 = vpow2.f32 %v415_v54 }
 0x381   :  { %v588_v55 = vpop.eup %587 }
 0x382   :  { %417 = vadd.xlane.f32.xlu0 %v588_v55 }
 0x40f   :  { %v418_v56 = vpop.xlane.xlu0 %417 }
 0x410   :  { %589 = vrcp.f32 %v418_v56 }
 0x41a   :  { %v590_v57 = vpop.eup %589 }
 0x41b   :  { %v420_v58 = vmul.f32 %v590_v57, %v418_v56 }
 0x41d   :  { %v421_v59 = vsub.f32 2.0, %v420_v58 }
 0x41f   :  { %v422_v60 = vmul.f32 %v590_v57, %v421_v59 }
 0x421   :  { %v423_v61 = vmul.f32 %v588_v55, %v422_v60 }
 0x423   :  { %424 = vst [vmem:[#allocation8] sm:$0xff] %v423_v61 }
 0x424   :  { %668 = shalt.err (!%p665_p0)
}
 0x425   :  { %s669_s22 = scalar_lea.hbm %s846_s7, 128 }
 0x426   :  { %p670_p1 = scmp.ne.s32.totalorder %s846_s7, %s669_s22  ;;  %p673_p2 = scmp.lt.u32.totalorder %s669_s22, %s846_s7 }
 0x428   :  { %p675_p3 = pnand %p673_p2, %p670_p1 }
 0x42a   :  { %678 = shalt.err (!%p675_p3)
}
 0x42b   :  { %434 = dma.vmem_to_hbm [thread:$0]  %s432_s6, 128, %s846_s7, [#allocation4]  }
 0x42c   :  { %683 = dma.done.wait [#allocation4], 128  }
 0x42d   :  { %684 = vsyncadd [#allocation4], 4294967168 }
 0x42e   :  { %438 = vsyncpa [#allocation3], 1 }
 0x42f   :  { %439 = vsyncpa [#allocation6], 1 }
 0x430   :  { %440 = vsyncpa [#allocation4], 1 }

</bundles_post_ra>
